<compile_context>
chip_gen: v5e
topology: v5e:2x2
jax: 0.10.0
libtpu: 0.0.40
codegen_flags: <defaults>
</compile_context>

<pallas_src>
import functools

import jax
import jax.numpy as jnp
from jax.experimental import pallas as pl
from jax.experimental.pallas import tpu as pltpu


_LANE_COLS = 512                         # lane-dense width: 4 x 128 lanes
_LANE_HALF = _LANE_COLS // 2             # per-TensorCore column half (stats path)
_TARGET_TILE_BYTES = 8 * 1024 * 1024     # ~8 MiB tiles: per-step DMA >> 0.35 us overhead
_VMEM_LIMIT = 40 * 1024 * 1024           # 2x(in)+2x(out) 8 MiB tiles = 32 MiB + slack


def _round_up(a, b):
    return ((a + b - 1) // b) * b


def _choose_tile_rows(rows, itemsize):
    """Dtype-aware row-tile size: ~_TARGET_TILE_BYTES per tile, multiple of 32
    sublanes (covers f32/bf16/int8 packing).  Small arrays get one full block."""
    tr = max(32, (_TARGET_TILE_BYTES // (_LANE_COLS * itemsize)) // 32 * 32)
    if tr >= rows:
        return rows                      # block == full array dims (always legal)
    return tr


def _to_lane_dense(x):
    """Return (x2d, n_true, padded): a (rows, 512) lane-dense view of x.

    When numel % 512 == 0 this is a metadata-only reshape (zero extra HBM
    traffic).  Otherwise fall back to padding the flat tail to the next 512
    multiple (<= 511 zeros, but the pad itself costs a copy of the activation).
    """
    n_true = x.size
    flat = x.reshape(-1)
    if n_true % _LANE_COLS == 0:
        return flat.reshape(n_true // _LANE_COLS, _LANE_COLS), n_true, False
    # TODO(synk): handle unaligned tails with a tiny separate tail kernel (or a
    # manual-DMA 1-D path) to avoid this whole-tensor pad + unpad copy.
    padded_len = _round_up(n_true, _LANE_COLS)
    flat = jnp.pad(flat, (0, padded_len - n_true))
    return flat.reshape(padded_len // _LANE_COLS, _LANE_COLS), n_true, True


# ----------------------------------------------------------------------------
# Elementwise hot paths: relu / clamp / clamp+fake-quant (tiled + pipelined)
# ----------------------------------------------------------------------------
def _relu_kernel(x_ref, o_ref):
    o_ref[...] = jnp.maximum(x_ref[...], 0).astype(o_ref.dtype)


def _clamp_quant_kernel(params_ref, x_ref, o_ref, *, quantize):
    abs_c = params_ref[0]                                  # |clamp|  (SMEM f32)
    clamped = jnp.clip(x_ref[...].astype(jnp.float32), 0.0, abs_c)
    if quantize:
        scale = params_ref[1]                              # (2^b - 1) / clamp
        inv_scale = params_ref[2]                          # clamp / (2^b - 1)
        o_ref[...] = (jnp.round(clamped * scale) * inv_scale).astype(o_ref.dtype)
    else:
        o_ref[...] = clamped.astype(o_ref.dtype)


def _run_elementwise(x2d, mode, params=None, tile_rows=None):
    rows, cols = x2d.shape
    if tile_rows is None:
        tile_rows = _choose_tile_rows(rows, x2d.dtype.itemsize)
    data_spec = pl.BlockSpec((tile_rows, cols), lambda i: (i, 0))

    if mode == "relu":
        kernel, in_specs, args = _relu_kernel, [data_spec], (x2d,)
    else:
        kernel = functools.partial(_clamp_quant_kernel, quantize=(mode == "quant"))
        in_specs = [pl.BlockSpec(memory_space=pltpu.MemorySpace.SMEM), data_spec]
        args = (params, x2d)

    return pl.pallas_call(
        kernel,
        out_shape=jax.ShapeDtypeStruct(x2d.shape, x2d.dtype),
        grid=(pl.cdiv(rows, tile_rows),),          # partial last block is masked
        in_specs=in_specs,
        out_specs=data_spec,
        compiler_params=pltpu.CompilerParams(
            dimension_semantics=("parallel",),
            vmem_limit_bytes=_VMEM_LIMIT,
        ),
    )(*args)


# ----------------------------------------------------------------------------
# pre_training_statistics: fused relu(x) + per-core partial sum / sumsq
# ----------------------------------------------------------------------------
def _stats_relu_kernel(x_ref, o_ref, psum_ref, psumsq_ref, sum_acc, sq_acc,
                       *, rows_valid, tile_rows):
    # grid = (2, T): axis 0 = lane half ("parallel" -> one per v7x TensorCore),
    # axis 1 = row tile ("arbitrary" reduction).  Scratch is private per core,
    # and on a single-core chip the c-major sweep re-zeros it between halves.
    i = pl.program_id(1)

    @pl.when(i == 0)
    def _():
        sum_acc[...] = jnp.zeros_like(sum_acc)
        sq_acc[...] = jnp.zeros_like(sq_acc)

    x = x_ref[...]
    o_ref[...] = jnp.maximum(x, 0).astype(o_ref.dtype)

    xf = x.astype(jnp.float32)
    if rows_valid % tile_rows != 0:
        # Partial last row tile: trailing rows of the block are stale DMA
        # padding -> mask them out of the statistics.
        rid = i * tile_rows + jax.lax.broadcasted_iota(jnp.int32, xf.shape, 0)
        xf = jnp.where(rid < rows_valid, xf, 0.0)

    # Vector accumulators: elementwise vreg adds only; no per-tile cross-lane
    # reduce, no SMEM scalar read-modify-write on the critical path.
    sum_acc[...] += jnp.sum(xf, axis=0, keepdims=True)
    sq_acc[...] += jnp.sum(xf * xf, axis=0, keepdims=True)

    @pl.when(i == pl.num_programs(1) - 1)
    def _():
        psum_ref[0] = sum_acc[...]
        psumsq_ref[0] = sq_acc[...]


def _run_stats_relu(x2d, n_true, tile_rows=None):
    rows, cols = x2d.shape
    half = cols // 2
    if tile_rows is None:
        tile_rows = _choose_tile_rows(rows, x2d.dtype.itemsize)
    kernel = functools.partial(_stats_relu_kernel, rows_valid=rows, tile_rows=tile_rows)

    data_spec = pl.BlockSpec((tile_rows, half), lambda c, i: (i, c))
    part_spec = pl.BlockSpec((1, 1, half), lambda c, i: (c, 0, 0))

    out2d, psum, psumsq = pl.pallas_call(
        kernel,
        out_shape=(
            jax.ShapeDtypeStruct(x2d.shape, x2d.dtype),
            jax.ShapeDtypeStruct((2, 1, half), jnp.float32),   # per-core partial sum
            jax.ShapeDtypeStruct((2, 1, half), jnp.float32),   # per-core partial sumsq
        ),
        grid=(2, pl.cdiv(rows, tile_rows)),
        in_specs=[data_spec],
        out_specs=(data_spec, part_spec, part_spec),
        scratch_shapes=[
            pltpu.VMEM((1, half), jnp.float32),
            pltpu.VMEM((1, half), jnp.float32),
        ],
        compiler_params=pltpu.CompilerParams(
            dimension_semantics=("parallel", "arbitrary"),
            vmem_limit_bytes=_VMEM_LIMIT,
        ),
    )(x2d)

    # Combine partials + finalize (tiny; done in XLA).  Zero padding contributes
    # nothing so the true element count is the denominator.  n_true == 1 yields
    # NaN, matching torch's unbiased std().
    # TODO(synk): per-tile shifted (Welford-style) accumulation if f32
    # cancellation ever matters for huge, high-mean activations.
    n = jnp.float32(n_true)
    total = jnp.sum(psum)
    total_sq = jnp.sum(psumsq)
    mean = total / n
    var = jnp.maximum((total_sq - n * mean * mean) / (n - 1.0), 0.0)
    return out2d, mean, jnp.sqrt(var)


# ----------------------------------------------------------------------------
# ActQuantBuffers.forward equivalent
# ----------------------------------------------------------------------------
def act_quant_buffers_forward(
    x_nchw,
    clamp_val,                    # shape (1,) parameter
    running_mean,                 # shape (1,) buffer
    running_std,                  # shape (1,) buffer
    *,
    quant=False,
    bitwidth=32,
    training=False,
    quatize_during_training=False,
    pre_training_statistics=False,
    momentum=0.9,
    _tile_rows=None,              # test hook: force a small row tile
):
    orig_shape = x_nchw.shape
    x2d, n_true, padded = _to_lane_dense(x_nchw)

    if pre_training_statistics:
        out2d, mean, std = _run_stats_relu(x2d, n_true, tile_rows=_tile_rows)
        running_mean = running_mean * momentum + mean * (1.0 - momentum)
        running_std = running_std * momentum + std * (1.0 - momentum)
    else:
        if quant and (not training or (training and quatize_during_training)):
            mode = "quant"
        elif quant:
            mode = "clamp"
        else:
            mode = "relu"
        params = None
        if mode != "relu":
            # Scalar math hoisted out of the kernel.  NOTE: like the torch
            # module, clamp_val == 0 makes the quant scale infinite.
            cv = clamp_val[0].astype(jnp.float32)
            full_scale = jnp.float32(2.0 ** bitwidth - 1.0)
            params = jnp.stack([jnp.abs(cv), full_scale / cv, cv / full_scale])
        out2d = _run_elementwise(x2d, mode, params, tile_rows=_tile_rows)

    if padded:
        out = out2d.reshape(-1)[:n_true].reshape(orig_shape)
    else:
        out = out2d.reshape(orig_shape)        # metadata-only reshape
    return out, running_mean, running_std

# TODO(synk): plot_statistic / gather_stats (matplotlib histogram dump) and
# print_clamp are host-side side effects with no Pallas equivalent.


# ----------------------------------------------------------------------------
# Pure-JAX reference (mirrors the PyTorch math) for a sanity check
# ----------------------------------------------------------------------------
def _ref_forward(x, clamp_val, quant, bitwidth, training, qdt, pts, rm, rs, momentum=0.9):
    def act_clamp(v, cv):
        return jnp.maximum(v, 0.0) - jnp.maximum(v - jnp.abs(cv), 0.0)

    if pts:
        rm = rm * momentum + jnp.mean(x) * (1.0 - momentum)
        rs = rs * momentum + jnp.std(x, ddof=1) * (1.0 - momentum)
        return jnp.maximum(x, 0.0), rm, rs
    if quant and (not training or (training and qdt)):
        cx = act_clamp(x, clamp_val[0])
        scale = (2.0 ** bitwidth - 1.0) / clamp_val[0]
        return jnp.round(cx * scale) / scale, rm, rs
    if quant:
        return act_clamp(x, clamp_val[0]), rm, rs
    return jnp.maximum(x, 0.0), rm, rs


if __name__ == "__main__":
    key = jax.random.PRNGKey(0)

    # Module __init__ shapes: clamp_val Parameter (1,), running_mean/std buffers (1,).
    # clamp_val initialized nonzero so the quant scale (2^b - 1)/clamp is finite
    # (torch init is zeros(1)).
    clamp_val = jnp.array([1.5], dtype=jnp.float32)
    rm0 = jnp.zeros((1,), dtype=jnp.float32)
    rs0 = jnp.zeros((1,), dtype=jnp.float32)

    cases = [
        ("aligned", (2, 4, 16, 16), None),   # 2048 elems: metadata-only reshape path
        ("partial", (1, 4, 36, 128), 16),    # 36 rows, tile 16: partial block + stats mask
        ("unaligned", (2, 3, 5, 7), None),   # 210 elems: pad-fallback path
    ]

    results = []
    for idx, (name, shape, tile_override) in enumerate(cases):
        x = jax.random.normal(jax.random.fold_in(key, idx), shape, dtype=jnp.float32)

        # 1) default construction path: quant=False -> relu
        y, _, _ = act_quant_buffers_forward(x, clamp_val, rm0, rs0,
                                            quant=False, bitwidth=32,
                                            _tile_rows=tile_override)
        r, _, _ = _ref_forward(x, clamp_val, False, 32, False, False, False, rm0, rs0)
        assert jnp.allclose(y, r, atol=1e-6), f"{name}: relu mismatch"

        # 2) quant inference path: clamp + fake-quant (bitwidth=8)
        y, _, _ = act_quant_buffers_forward(x, clamp_val, rm0, rs0,
                                            quant=True, bitwidth=8, training=False,
                                            _tile_rows=tile_override)
        r, _, _ = _ref_forward(x, clamp_val, True, 8, False, False, False, rm0, rs0)
        assert jnp.allclose(y, r, atol=1e-6), f"{name}: quant mismatch"

        # 3) quant training without quantize_during_training -> clamp only
        y, _, _ = act_quant_buffers_forward(x, clamp_val, rm0, rs0,
                                            quant=True, bitwidth=8, training=True,
                                            quatize_during_training=False,
                                            _tile_rows=tile_override)
        r, _, _ = _ref_forward(x, clamp_val, True, 8, True, False, False, rm0, rs0)
        assert jnp.allclose(y, r, atol=1e-6), f"{name}: clamp mismatch"

        # 4) pre_training_statistics: fused relu + running mean/std EMA update
        y, rm, rs = act_quant_buffers_forward(x, clamp_val, rm0, rs0,
                                              pre_training_statistics=True,
                                              _tile_rows=tile_override)
        r, rm_r, rs_r = _ref_forward(x, clamp_val, False, 32, True, False, True, rm0, rs0)
        assert jnp.allclose(y, r, atol=1e-6), f"{name}: stats relu mismatch"
        assert jnp.allclose(rm, rm_r, atol=1e-5), f"{name}: running_mean mismatch"
        assert jnp.allclose(rs, rs_r, atol=1e-4), f"{name}: running_std mismatch"
        results.append((y, rm, rs))

    jax.block_until_ready(results)
    print("KERNEL_OK")
</pallas_src>

<mosaic_0001>
module attributes {stable_mosaic.version = 11 : i64} {
  func.func @_relu_kernel(%arg0: i32, %arg1: memref<4x512xf32, #tpu.memory_space<vmem>>, %arg2: memref<4x512xf32, #tpu.memory_space<vmem>>) attributes {dimension_semantics = [#tpu.dimension_semantics<parallel>], iteration_bounds = array<i64: 1>, scalar_prefetch = 0 : i64, scratch_operands = 0 : i64, tpu.core_type = #tpu.core_type<tc>, window_params = [{transform_indices = @transform_0, window_bounds = array<i64: 4, 512>}, {transform_indices = @transform_1, window_bounds = array<i64: 4, 512>}]} {
    %c0 = arith.constant 0 : index
    %c0_0 = arith.constant 0 : index
    %0 = vector.load %arg1[%c0, %c0_0] : memref<4x512xf32, #tpu.memory_space<vmem>>, vector<4x512xf32>
    %cst = arith.constant 0.000000e+00 : f32
    %1 = vector.broadcast %cst : f32 to vector<4x512xf32>
    %2 = arith.maximumf %0, %1 : vector<4x512xf32>
    %c0_1 = arith.constant 0 : index
    %c0_2 = arith.constant 0 : index
    %3 = vector.load %arg2[%c0_1, %c0_2] : memref<4x512xf32, #tpu.memory_space<vmem>>, vector<4x512xf32>
    tpu.vector_store %arg2[%c0_1, %c0_2], %2 {strides = array<i32>} : memref<4x512xf32, #tpu.memory_space<vmem>>, vector<4x512xf32>,
    return
  }
  func.func @transform_0(%arg0: i32) -> (i32, i32) {
    %c0_i32 = arith.constant 0 : i32
    %c0_i32_0 = arith.constant 0 : i32
    return %arg0, %c0_i32 : i32, i32
  }
  func.func @transform_1(%arg0: i32) -> (i32, i32) {
    %c0_i32 = arith.constant 0 : i32
    %c0_i32_0 = arith.constant 0 : i32
    return %arg0, %c0_i32 : i32, i32
  }
}

</mosaic_0001>

<bundles_post_ra>
// kernel: tpu_custom_call.1
= control target key start
LH: loop header
LB: loop body
LE: loop exit
PB: predicated region body
PF: predicated region fallthrough
CT: control target
= control target key end

     0   :  { %6 = vsyncpa [#allocation3], 0  ;;  %s118_s0 = inlined_call_operand.hbm [shape: f32[4,512], index: 0, kind: input, shape index: {}]   ;;  %s119_s1 = inlined_call_operand.hbm [shape: f32[4,512], index: 1, kind: output, shape index: {}]  }
   0x1   :  { %7 = vsyncpa [#allocation4], 0  ;;  %s13_s8 = sshll.u32 %s118_s0, 4  ;;  %s100_s9 = smov [#allocation2]   ;;  %s14_s8 = int_to_ptr.hbm [resolvable:$true] %s13_s8 }
   0x2   :  { %s15_s10 = sshll.u32 %s100_s9, 4  ;;  %s16_s10 = int_to_ptr.vmem [resolvable:$true] %s15_s10 }
   0x3   :  { %18 = dma.hbm_to_vmem [thread:$0]  %s14_s8, 256, %s16_s10, [#allocation3]  }
   0x4   :  { %96 = dma.done.wait [#allocation3], 256  }
   0x5   :  { %97 = vsyncadd [#allocation3], 4294967040  ;;  %s101_s11 = smov [#allocation5]   ;;  %s36_s15 = sshll.u32 %s119_s1, 4  ;;  %v23_v0 = vld [vmem:[#allocation2] sm:$0xff]  ;;  %v24_v1 = vld [vmem:[#allocation2 + $0x8] sm:$0xff]  ;;  %s37_s15 = int_to_ptr.hbm [resolvable:$true] %s36_s15 }
   0x6   :  { %s34_s12 = sshll.u32 %s101_s11, 4  ;;  %v25_v2 = vmax.f32 %v23_v0, 0.0  ;;  %v26_v3 = vmax.f32 %v24_v1, 0.0  ;;  %s35_s12 = int_to_ptr.vmem [resolvable:$true] %s34_s12 }
   0x8   :  { %27 = vst [vmem:[#allocation5] sm:$0xff] %v25_v2 }
   0x9   :  { %28 = vst [vmem:[#allocation5 + $0x8] sm:$0xff] %v26_v3 }
   0xa   :  { %39 = dma.vmem_to_hbm [thread:$0]  %s35_s12, 256, %s37_s15, [#allocation4]  }
   0xb   :  { %98 = dma.done.wait [#allocation4], 256  }
   0xc   :  { %99 = vsyncadd [#allocation4], 4294967040 }
   0xd   :  { %44 = vsyncpa [#allocation3], 1 }
   0xe   :  { %45 = vsyncpa [#allocation4], 1 }

</bundles_post_ra>
